<compile_context>
chip_gen: v7x
topology: tpu7x:2x2x1
jax: 0.10.0
libtpu: 0.0.40
codegen_flags: <defaults>
</compile_context>

<pallas_src>
import jax
import jax.numpy as jnp
from jax.experimental import pallas as pl
from jax.experimental.pallas import tpu as pltpu


def _round_up(n, m):
    return ((n + m - 1) // m) * m


def _softplus(v):
    # PyTorch Softplus default: beta=1, threshold=20 -> linear above threshold.
    return jnp.where(v > 20.0, v, jnp.log1p(jnp.exp(jnp.minimum(v, 20.0))))


def mlp_kernel(x_ref,
               w1_ref, b1_ref,
               w2_ref, b2_ref,
               w3_ref, b3_ref,
               wv_ref, bv_ref,
               out_ref):
    cdt = w1_ref.dtype  # compute dtype of the matmul operands (bf16 or f32)

    h = jnp.dot(x_ref[...], w1_ref[...],
                preferred_element_type=jnp.float32) + b1_ref[...]
    h = jnp.maximum(h, 0.0).astype(cdt)

    h = jnp.dot(h, w2_ref[...],
                preferred_element_type=jnp.float32) + b2_ref[...]
    h = jnp.maximum(h, 0.0).astype(cdt)

    h = jnp.dot(h, w3_ref[...],
                preferred_element_type=jnp.float32) + b3_ref[...]
    h = jnp.maximum(h, 0.0).astype(cdt)

    # Value head: wv is zero-padded to a lane-dense (64, 128) slab so the
    # output store is an unmasked, lane-dense vst; the wrapper slices col 0.
    v = jnp.dot(h, wv_ref[...],
                preferred_element_type=jnp.float32) + bv_ref[...]
    out_ref[...] = _softplus(v)


def model_forward(x, params, *, compute_dtype=jnp.bfloat16, tile_b=512):
    """x: (B, state_stack, input_dim) float32 -> (B, output_dim) float32."""
    B = x.shape[0]
    x2d = x.reshape(B, -1)  # x.view(x.shape[0], -1)
    (w1, b1), (w2, b2), (w3, b3), (wv, bv) = params
    in_features = x2d.shape[1]
    out_dim = wv.shape[1]

    # Pad ragged dims: K (44 -> 128 lanes), N of the head (1 -> 128 lanes),
    # and the batch to the sublane granule / tile size.
    k_pad = _round_up(in_features, 128)
    n_pad = _round_up(out_dim, 128)
    tile_b = min(tile_b, _round_up(B, 16))
    b_pad = _round_up(B, tile_b)

    x_p = jnp.zeros((b_pad, k_pad), compute_dtype)
    x_p = x_p.at[:B, :in_features].set(x2d.astype(compute_dtype))

    w1_p = jnp.zeros((k_pad, w1.shape[1]), compute_dtype)
    w1_p = w1_p.at[:in_features, :].set(w1.astype(compute_dtype))
    w2_p = w2.astype(compute_dtype)
    w3_p = w3.astype(compute_dtype)
    wv_p = jnp.zeros((wv.shape[0], n_pad), compute_dtype)
    wv_p = wv_p.at[:, :out_dim].set(wv.astype(compute_dtype))

    # Biases stay f32 (added to the f32 accumulators).
    b1_p = b1.astype(jnp.float32)
    b2_p = b2.astype(jnp.float32)
    b3_p = b3.astype(jnp.float32)
    bv_p = jnp.zeros((1, n_pad), jnp.float32).at[:, :out_dim].set(
        bv.astype(jnp.float32))

    operands = (x_p, w1_p, b1_p, w2_p, b2_p, w3_p, b3_p, wv_p, bv_p)

    def resident_spec(a):
        # Same full-array block on every grid step -> stays VMEM-resident.
        return pl.BlockSpec(a.shape, lambda i: (0,) * a.ndim)

    grid = (b_pad // tile_b,)
    out = pl.pallas_call(
        mlp_kernel,
        out_shape=jax.ShapeDtypeStruct((b_pad, n_pad), jnp.float32),
        grid=grid,
        in_specs=[pl.BlockSpec((tile_b, k_pad), lambda i: (i, 0))]
                 + [resident_spec(a) for a in operands[1:]],
        out_specs=pl.BlockSpec((tile_b, n_pad), lambda i: (i, 0)),
        compiler_params=pltpu.CompilerParams(
            dimension_semantics=("parallel",)),
    )(*operands)

    return out[:B, :out_dim]


def init_params(key, in_features, architecture, output_dim):
    """Deterministic init mimicking nn.Linear defaults (uniform +/- 1/sqrt(fan_in))."""
    dims = [in_features] + list(architecture) + [output_dim]
    params = []
    for i in range(len(dims) - 1):
        fan_in, fan_out = dims[i], dims[i + 1]
        key, kw, kb = jax.random.split(key, 3)
        bound = 1.0 / jnp.sqrt(jnp.float32(fan_in))
        w = jax.random.uniform(kw, (fan_in, fan_out), jnp.float32, -bound, bound)
        b = jax.random.uniform(kb, (1, fan_out), jnp.float32, -bound, bound)
        params.append((w, b))
    return params


def reference_forward(x, params):
    h = x.reshape(x.shape[0], -1)
    (w1, b1), (w2, b2), (w3, b3), (wv, bv) = params
    h = jnp.maximum(h @ w1 + b1, 0.0)
    h = jnp.maximum(h @ w2 + b2, 0.0)
    h = jnp.maximum(h @ w3 + b3, 0.0)
    v = h @ wv + bv
    return jax.nn.softplus(v)


if __name__ == "__main__":
    # Small deterministic example consistent with the module:
    #   state_stack=4, input_dim=11, architecture=[256,128,64], output_dim=1
    state_stack, input_dim, output_dim = 4, 11, 1
    architecture = [256, 128, 64]
    batch = 2

    key = jax.random.PRNGKey(0)
    key, kx = jax.random.split(key)
    x = jax.random.normal(kx, (batch, state_stack, input_dim), jnp.float32)

    # TODO(synk): `Base` source isn't provided; implemented as the standard
    # Linear+ReLU MLP over `architecture` (dropout p=None => identity).
    params = init_params(key, state_stack * input_dim, architecture, output_dim)

    ref = reference_forward(x, params)

    # f32 path: tight check against the pure-JAX reference.
    out_f32 = jax.block_until_ready(
        model_forward(x, params, compute_dtype=jnp.float32))
    assert out_f32.shape == (batch, output_dim)
    assert jnp.allclose(out_f32, ref, atol=1e-4, rtol=1e-4), (out_f32, ref)

    # bf16 weights/activations (MXU-native), f32 accumulation: loose check.
    out_bf16 = jax.block_until_ready(
        model_forward(x, params, compute_dtype=jnp.bfloat16))
    assert out_bf16.shape == (batch, output_dim)
    assert jnp.allclose(out_bf16, ref, atol=3e-2, rtol=3e-2), (out_bf16, ref)

    print("KERNEL_OK")
</pallas_src>

<mosaic_0001>
module attributes {stable_mosaic.version = 11 : i64} {
  func.func @mlp_kernel(%arg0: i32, %arg1: memref<16x128xf32, #tpu.memory_space<vmem>>, %arg2: memref<128x256xf32, #tpu.memory_space<vmem>>, %arg3: memref<1x256xf32, #tpu.memory_space<vmem>>, %arg4: memref<256x128xf32, #tpu.memory_space<vmem>>, %arg5: memref<1x128xf32, #tpu.memory_space<vmem>>, %arg6: memref<128x64xf32, #tpu.memory_space<vmem>>, %arg7: memref<1x64xf32, #tpu.memory_space<vmem>>, %arg8: memref<64x128xf32, #tpu.memory_space<vmem>>, %arg9: memref<1x128xf32, #tpu.memory_space<vmem>>, %arg10: memref<16x128xf32, #tpu.memory_space<vmem>>) attributes {dimension_semantics = [#tpu.dimension_semantics<parallel>], iteration_bounds = array<i64: 1>, scalar_prefetch = 0 : i64, scratch_operands = 0 : i64, tpu.core_type = #tpu.core_type<tc>, window_params = [{transform_indices = @transform_0, window_bounds = array<i64: 16, 128>}, {pipeline_mode = #tpu.pipeline_mode<synchronous>, transform_indices = @transform_1, window_bounds = array<i64: 128, 256>}, {pipeline_mode = #tpu.pipeline_mode<synchronous>, transform_indices = @transform_2, window_bounds = array<i64: 1, 256>}, {pipeline_mode = #tpu.pipeline_mode<synchronous>, transform_indices = @transform_3, window_bounds = array<i64: 256, 128>}, {pipeline_mode = #tpu.pipeline_mode<synchronous>, transform_indices = @transform_4, window_bounds = array<i64: 1, 128>}, {pipeline_mode = #tpu.pipeline_mode<synchronous>, transform_indices = @transform_5, window_bounds = array<i64: 128, 64>}, {pipeline_mode = #tpu.pipeline_mode<synchronous>, transform_indices = @transform_6, window_bounds = array<i64: 1, 64>}, {pipeline_mode = #tpu.pipeline_mode<synchronous>, transform_indices = @transform_7, window_bounds = array<i64: 64, 128>}, {pipeline_mode = #tpu.pipeline_mode<synchronous>, transform_indices = @transform_8, window_bounds = array<i64: 1, 128>}, {transform_indices = @transform_9, window_bounds = array<i64: 16, 128>}]} {
    %c0 = arith.constant 0 : index
    %c0_0 = arith.constant 0 : index
    %0 = vector.load %arg1[%c0, %c0_0] : memref<16x128xf32, #tpu.memory_space<vmem>>, vector<16x128xf32>
    %c0_1 = arith.constant 0 : index
    %c0_2 = arith.constant 0 : index
    %1 = vector.load %arg2[%c0_1, %c0_2] : memref<128x256xf32, #tpu.memory_space<vmem>>, vector<128x256xf32>
    %cst = arith.constant dense<0.000000e+00> : vector<16x256xf32>
    %2 = tpu.matmul %0, %1, %cst {dimension_numbers = #tpu.dot_dimension_numbers<[1], [0], [0], [1], [0, 0, 1, 1], [], []>} : vector<16x128xf32>, vector<128x256xf32>, vector<16x256xf32> -> vector<16x256xf32>
    %c0_3 = arith.constant 0 : index
    %c0_4 = arith.constant 0 : index
    %3 = vector.load %arg3[%c0_3, %c0_4] : memref<1x256xf32, #tpu.memory_space<vmem>>, vector<1x256xf32>
    %4 = vector.broadcast %3 : vector<1x256xf32> to vector<16x256xf32>
    %5 = arith.addf %2, %4 : vector<16x256xf32>
    %cst_5 = arith.constant 0.000000e+00 : f32
    %6 = vector.broadcast %cst_5 : f32 to vector<16x256xf32>
    %7 = arith.maximumf %5, %6 : vector<16x256xf32>
    %c0_6 = arith.constant 0 : index
    %c0_7 = arith.constant 0 : index
    %8 = vector.load %arg4[%c0_6, %c0_7] : memref<256x128xf32, #tpu.memory_space<vmem>>, vector<256x128xf32>
    %cst_8 = arith.constant dense<0.000000e+00> : vector<16x128xf32>
    %9 = tpu.matmul %7, %8, %cst_8 {dimension_numbers = #tpu.dot_dimension_numbers<[1], [0], [0], [1], [0, 0, 1, 1], [], []>} : vector<16x256xf32>, vector<256x128xf32>, vector<16x128xf32> -> vector<16x128xf32>
    %c0_9 = arith.constant 0 : index
    %c0_10 = arith.constant 0 : index
    %10 = vector.load %arg5[%c0_9, %c0_10] : memref<1x128xf32, #tpu.memory_space<vmem>>, vector<1x128xf32>
    %11 = vector.broadcast %10 : vector<1x128xf32> to vector<16x128xf32>
    %12 = arith.addf %9, %11 : vector<16x128xf32>
    %cst_11 = arith.constant 0.000000e+00 : f32
    %13 = vector.broadcast %cst_11 : f32 to vector<16x128xf32>
    %14 = arith.maximumf %12, %13 : vector<16x128xf32>
    %c0_12 = arith.constant 0 : index
    %c0_13 = arith.constant 0 : index
    %15 = vector.load %arg6[%c0_12, %c0_13] : memref<128x64xf32, #tpu.memory_space<vmem>>, vector<128x64xf32>
    %cst_14 = arith.constant dense<0.000000e+00> : vector<16x64xf32>
    %16 = tpu.matmul %14, %15, %cst_14 {dimension_numbers = #tpu.dot_dimension_numbers<[1], [0], [0], [1], [0, 0, 1, 1], [], []>} : vector<16x128xf32>, vector<128x64xf32>, vector<16x64xf32> -> vector<16x64xf32>
    %c0_15 = arith.constant 0 : index
    %c0_16 = arith.constant 0 : index
    %17 = vector.load %arg7[%c0_15, %c0_16] : memref<1x64xf32, #tpu.memory_space<vmem>>, vector<1x64xf32>
    %18 = vector.broadcast %17 : vector<1x64xf32> to vector<16x64xf32>
    %19 = arith.addf %16, %18 : vector<16x64xf32>
    %cst_17 = arith.constant 0.000000e+00 : f32
    %20 = vector.broadcast %cst_17 : f32 to vector<16x64xf32>
    %21 = arith.maximumf %19, %20 : vector<16x64xf32>
    %c0_18 = arith.constant 0 : index
    %c0_19 = arith.constant 0 : index
    %22 = vector.load %arg8[%c0_18, %c0_19] : memref<64x128xf32, #tpu.memory_space<vmem>>, vector<64x128xf32>
    %cst_20 = arith.constant dense<0.000000e+00> : vector<16x128xf32>
    %23 = tpu.matmul %21, %22, %cst_20 {dimension_numbers = #tpu.dot_dimension_numbers<[1], [0], [0], [1], [0, 0, 1, 1], [], []>} : vector<16x64xf32>, vector<64x128xf32>, vector<16x128xf32> -> vector<16x128xf32>
    %c0_21 = arith.constant 0 : index
    %c0_22 = arith.constant 0 : index
    %24 = vector.load %arg9[%c0_21, %c0_22] : memref<1x128xf32, #tpu.memory_space<vmem>>, vector<1x128xf32>
    %25 = vector.broadcast %24 : vector<1x128xf32> to vector<16x128xf32>
    %26 = arith.addf %23, %25 : vector<16x128xf32>
    %cst_23 = arith.constant 2.000000e+01 : f32
    %27 = vector.broadcast %cst_23 : f32 to vector<16x128xf32>
    %28 = arith.cmpf ogt, %26, %27 : vector<16x128xf32>
    %cst_24 = arith.constant 2.000000e+01 : f32
    %29 = vector.broadcast %cst_24 : f32 to vector<16x128xf32>
    %30 = arith.minimumf %26, %29 : vector<16x128xf32>
    %31 = math.exp %30 : vector<16x128xf32>
    %32 = math.log1p %31 : vector<16x128xf32>
    %33 = arith.select %28, %26, %32 : vector<16x128xi1>, vector<16x128xf32>
    %c0_25 = arith.constant 0 : index
    %c0_26 = arith.constant 0 : index
    %34 = vector.load %arg10[%c0_25, %c0_26] : memref<16x128xf32, #tpu.memory_space<vmem>>, vector<16x128xf32>
    tpu.vector_store %arg10[%c0_25, %c0_26], %33 {strides = array<i32>} : memref<16x128xf32, #tpu.memory_space<vmem>>, vector<16x128xf32>,
    return
  }
  func.func @transform_0(%arg0: i32) -> (i32, i32) {
    %c0_i32 = arith.constant 0 : i32
    %c0_i32_0 = arith.constant 0 : i32
    return %arg0, %c0_i32 : i32, i32
  }
  func.func @transform_1(%arg0: i32) -> (i32, i32) {
    %c0_i32 = arith.constant 0 : i32
    %c0_i32_0 = arith.constant 0 : i32
    %c0_i32_1 = arith.constant 0 : i32
    return %c0_i32, %c0_i32_0 : i32, i32
  }
  func.func @transform_2(%arg0: i32) -> (i32, i32) {
    %c0_i32 = arith.constant 0 : i32
    %c0_i32_0 = arith.constant 0 : i32
    %c0_i32_1 = arith.constant 0 : i32
    return %c0_i32, %c0_i32_0 : i32, i32
  }
  func.func @transform_3(%arg0: i32) -> (i32, i32) {
    %c0_i32 = arith.constant 0 : i32
    %c0_i32_0 = arith.constant 0 : i32
    %c0_i32_1 = arith.constant 0 : i32
    return %c0_i32, %c0_i32_0 : i32, i32
  }
  func.func @transform_4(%arg0: i32) -> (i32, i32) {
    %c0_i32 = arith.constant 0 : i32
    %c0_i32_0 = arith.constant 0 : i32
    %c0_i32_1 = arith.constant 0 : i32
    return %c0_i32, %c0_i32_0 : i32, i32
  }
  func.func @transform_5(%arg0: i32) -> (i32, i32) {
    %c0_i32 = arith.constant 0 : i32
    %c0_i32_0 = arith.constant 0 : i32
    %c0_i32_1 = arith.constant 0 : i32
    return %c0_i32, %c0_i32_0 : i32, i32
  }
  func.func @transform_6(%arg0: i32) -> (i32, i32) {
    %c0_i32 = arith.constant 0 : i32
    %c0_i32_0 = arith.constant 0 : i32
    %c0_i32_1 = arith.constant 0 : i32
    return %c0_i32, %c0_i32_0 : i32, i32
  }
  func.func @transform_7(%arg0: i32) -> (i32, i32) {
    %c0_i32 = arith.constant 0 : i32
    %c0_i32_0 = arith.constant 0 : i32
    %c0_i32_1 = arith.constant 0 : i32
    return %c0_i32, %c0_i32_0 : i32, i32
  }
  func.func @transform_8(%arg0: i32) -> (i32, i32) {
    %c0_i32 = arith.constant 0 : i32
    %c0_i32_0 = arith.constant 0 : i32
    %c0_i32_1 = arith.constant 0 : i32
    return %c0_i32, %c0_i32_0 : i32, i32
  }
  func.func @transform_9(%arg0: i32) -> (i32, i32) {
    %c0_i32 = arith.constant 0 : i32
    %c0_i32_0 = arith.constant 0 : i32
    return %arg0, %c0_i32 : i32, i32
  }
}

</mosaic_0001>

<bundles_post_ra>
// kernel: tpu_custom_call.1
= control target key start
LH: loop header
LB: loop body
LE: loop exit
PB: predicated region body
PF: predicated region fallthrough
CT: control target
= control target key end

     0   :  { %14 = vsyncpa [#allocation3], 0  ;;  %s1066_s0 = inlined_call_operand.vmem [shape: f32[16,128], index: 0, kind: input, shape index: {}]   ;;  %s1067_s1 = inlined_call_operand.hbm [shape: f32[128,256], index: 1, kind: input, shape index: {}]   ;;  %s1068_s2 = inlined_call_operand.vmem [shape: f32[1,256], index: 2, kind: input, shape index: {}]   ;;  %s1069_s3 = inlined_call_operand.hbm [shape: f32[256,128], index: 3, kind: input, shape index: {}]   ;;  %s1070_s4 = inlined_call_operand.vmem [shape: f32[1,128], index: 4, kind: input, shape index: {}]   ;;  %s1071_s5 = inlined_call_operand.vmem [shape: f32[128,64], index: 5, kind: input, shape index: {}]   ;;  %s1072_s6 = inlined_call_operand.vmem [shape: f32[1,64], index: 6, kind: input, shape index: {}]   ;;  %s1073_s7 = inlined_call_operand.vmem [shape: f32[64,128], index: 7, kind: input, shape index: {}]   ;;  %s1074_s8 = inlined_call_operand.vmem [shape: f32[1,128], index: 8, kind: input, shape index: {}]   ;;  %s1075_s9 = inlined_call_operand.hbm [shape: f32[16,128], index: 9, kind: output, shape index: {}]  }
   0x1   :  { %15 = vsyncpa [#allocation6], 0 }
   0x2   :  { %16 = vsyncpa [#allocation4], 0  ;;  %s874_s30 = smov [#allocation2]   ;;  %s802_s13 = scalar_lea.hbm %s1067_s1, 4096 }
   0x3   :  { %s24_s10 = sshll.u32 %s874_s30, 4  ;;  %p803_p0 = scmp.ne.s32.totalorder %s1067_s1, %s802_s13  ;;  %s25_s10 = int_to_ptr.vmem [resolvable:$true] %s24_s10 }
   0x4   :  { %p806_p1 = scmp.lt.u32.totalorder %s802_s13, %s1067_s1 }
   0x6   :  { %p808_p2 = pnand %p806_p1, %p803_p0 }
   0x8   :  { %811 = shalt.err (!%p808_p2)
}
   0x9   :  { %s812_s18 = scalar_lea.vmem %s25_s10, 4096  ;;  %p817_p4 = scmp.lt.s32.totalorder %s25_s10, %s25_s10 }
   0xa   :  { %p813_p3 = scmp.ne.s32.totalorder %s25_s10, %s812_s18  ;;  %p818_p5 = scmp.lt.s32.totalorder %s812_s18, %s812_s18 }
   0xc   :  { %p819_p6 = por %p818_p5, %p817_p4 }
   0xe   :  { %p820_p7 = pnand %p819_p6, %p813_p3 }
  0x10   :  { %823 = shalt.err (!%p820_p7)
}
  0x11   :  { %s875_s19 = smov 256   ;;  %s876_s20 = smov 16  }
  0x12   :  { %30 = dma.hbm_to_vmem [thread:$0]  %s1067_s1, 4096, %s25_s10, [#allocation3], %s875_s19, %s875_s19, %s876_s20  }
  0x13   :  { %s877_s23 = smov [#allocation5]   ;;  %s824_s27 = scalar_lea.hbm %s1069_s3, 4096 }
  0x14   :  { %s38_s24 = sshll.u32 %s877_s23, 4  ;;  %p825_p8 = scmp.ne.s32.totalorder %s1069_s3, %s824_s27  ;;  %s39_s24 = int_to_ptr.vmem [resolvable:$true] %s38_s24 }
  0x15   :  { %p828_p9 = scmp.lt.u32.totalorder %s824_s27, %s1069_s3 }
  0x17   :  { %p830_p10 = pnand %p828_p9, %p825_p8 }
  0x19   :  { %833 = shalt.err (!%p830_p10)
}
  0x1a   :  { %s834_s12 = scalar_lea.vmem %s39_s24, 4096  ;;  %p839_p12 = scmp.lt.s32.totalorder %s39_s24, %s39_s24 }
  0x1b   :  { %p835_p11 = scmp.ne.s32.totalorder %s39_s24, %s834_s12  ;;  %p840_p13 = scmp.lt.s32.totalorder %s834_s12, %s834_s12 }
  0x1d   :  { %p841_p0 = por %p840_p13, %p839_p12 }
  0x1f   :  { %p842_p1 = pnand %p841_p0, %p835_p11 }
  0x21   :  { %845 = shalt.err (!%p842_p1)
}
  0x22   :  { %s878_s1 = smov 128   ;;  %s879_s10 = smov 8  }
  0x23   :  { %44 = dma.hbm_to_vmem [thread:$0]  %s1069_s3, 4096, %s39_s24, [#allocation6], %s878_s1, %s878_s1, %s879_s10  }
  0x24   :  { %868 = dma.done.wait [#allocation3], 4096  }
  0x25   :  { %869 = vsyncadd [#allocation3], 4294963200 }
  0x26   :  { %870 = dma.done.wait [#allocation6], 4096  }
  0x27   :  { %871 = vsyncadd [#allocation6], 4294963200  ;;  %v880_v0 = vmov 0.0   ;;  %v64_v1 = vld [vmem:[#allocation2 + $0x8] sm:$0xff]  ;;  %v66_v2 = vld [vmem:[#allocation2 + $0x18] sm:$0xff]  ;;  %vm419_vm0 = vcmask 523264  }
  0x28   :  { %171 = vmatprep.mubr.f32.mxu0 %v880_v0  ;;  %v63_v3 = vld [vmem:[#allocation2] sm:$0xff]  ;;  %v674_v4 = vpack.c.bf16 %v66_v2, %v64_v1  ;;  %v65_v5 = vld [vmem:[#allocation2 + $0x10] sm:$0xff]  ;;  %v68_v6 = vld [vmem:[#allocation2 + $0x28] sm:$0xff] }
  0x29   :  { %v70_v7 = vld [vmem:[#allocation2 + $0x38] sm:$0xff]  ;;  %v676_v8 = vpack.c.bf16 %v65_v5, %v63_v3  ;;  %v67_v10 = vld [vmem:[#allocation2 + $0x20] sm:$0xff]  ;;  %v69_v11 = vld [vmem:[#allocation2 + $0x30] sm:$0xff] }
  0x2a   :  { %v678_v9 = vpack.c.bf16 %v70_v7, %v68_v6  ;;  %v72_v12 = vld [vmem:[#allocation2 + $0x48] sm:$0xff]  ;;  %675 = vmatprep.subr.bf16.mxu0 %v674_v4  ;;  %v74_v13 = vld [vmem:[#allocation2 + $0x58] sm:$0xff]  ;;  %v680_v14 = vpack.c.bf16 %v69_v11, %v67_v10  ;;  %v71_v16 = vld [vmem:[#allocation2 + $0x40] sm:$0xff] }
  0x2b   :  { %677 = vmatpush1.bf16.msra.mxu0 %v676_v8  ;;  %v682_v15 = vpack.c.bf16 %v74_v13, %v72_v12  ;;  %v73_v17 = vld [vmem:[#allocation2 + $0x50] sm:$0xff]  ;;  %v76_v18 = vld [vmem:[#allocation2 + $0x68] sm:$0xff]  ;;  %v78_v19 = vld [vmem:[#allocation2 + $0x78] sm:$0xff] }
  0x2c   :  { %679 = vmatprep.subr.bf16.mxu0 %v678_v9  ;;  %v684_v20 = vpack.c.bf16 %v73_v17, %v71_v16  ;;  %v686_v21 = vpack.c.bf16 %v78_v19, %v76_v18  ;;  %v75_v22 = vld [vmem:[#allocation2 + $0x60] sm:$0xff]  ;;  %v77_v23 = vld [vmem:[#allocation2 + $0x70] sm:$0xff]  ;;  %v80_v24 = vld [vmem:[#allocation2 + $0x88] sm:$0xff] }
  0x2d   :  { %v82_v25 = vld [vmem:[#allocation2 + $0x98] sm:$0xff]  ;;  %v79_v26 = vld [vmem:[#allocation2 + $0x80] sm:$0xff]  ;;  %v81_v27 = vld [vmem:[#allocation2 + $0x90] sm:$0xff]  ;;  %v688_v30 = vpack.c.bf16 %v77_v23, %v75_v22 }
  0x2e   :  { %v204_v28 = vld [vmem:[#allocation5 + $0x80] sm:$0xff]  ;;  %v205_v29 = vld [vmem:[#allocation5 + $0x88] sm:$0xff]  ;;  %v206_v35 = vld [vmem:[#allocation5 + $0x90] sm:$0xff]  ;;  %v690_v36 = vpack.c.bf16 %v82_v25, %v80_v24  ;;  %v692_v46 = vpack.c.bf16 %v81_v27, %v79_v26 }
  0x2f   :  { %681 = vmatpush1.bf16.msra.mxu0 %v680_v14  ;;  %v84_v31 = vld [vmem:[#allocation2 + $0xa8] sm:$0xff]  ;;  %v706_v32 = vpack.c.bf16 %v205_v29, %v204_v28  ;;  %v188_v33 = vld [vmem:[#allocation5] sm:$0xff]  ;;  %v207_v38 = vld [vmem:[#allocation5 + $0x98] sm:$0xff] }
  0x30   :  { %683 = vmatprep.subr.bf16.mxu0 %v682_v15  ;;  %v189_v34 = vld [vmem:[#allocation5 + $0x8] sm:$0xff]  ;;  %v190_v39 = vld [vmem:[#allocation5 + $0x10] sm:$0xff]  ;;  %v191_v40 = vld [vmem:[#allocation5 + $0x18] sm:$0xff]  ;;  %v710_v42 = vpack.c.bf16 %v207_v38, %v206_v35 }
  0x31   :  { %v708_v37 = vpack.c.bf16 %v189_v34, %v188_v33  ;;  %v86_v41 = vld [vmem:[#allocation2 + $0xb8] sm:$0xff]  ;;  %707 = vmatprep.subr.bf16.mxu1 %v706_v32  ;;  %v208_v43 = vld [vmem:[#allocation5 + $0xa0] sm:$0xff]  ;;  %v209_v44 = vld [vmem:[#allocation5 + $0xa8] sm:$0xff]  ;;  %v712_v45 = vpack.c.bf16 %v191_v40, %v190_v39 }
  0x32   :  { %v83_v47 = vld [vmem:[#allocation2 + $0xa0] sm:$0xff]  ;;  %v714_v48 = vpack.c.bf16 %v209_v44, %v208_v43  ;;  %v193_v50 = vld [vmem:[#allocation5 + $0x28] sm:$0xff]  ;;  %v694_v51 = vpack.c.bf16 %v86_v41, %v84_v31  ;;  %v85_v52 = vld [vmem:[#allocation2 + $0xb0] sm:$0xff] }
  0x33   :  { %685 = vmatpush1.bf16.msra.mxu0 %v684_v20  ;;  %709 = vmatpush3.bf16.msra.mxu1 %v708_v37  ;;  %v192_v49 = vld [vmem:[#allocation5 + $0x20] sm:$0xff]  ;;  %v210_v53 = vld [vmem:[#allocation5 + $0xb0] sm:$0xff]  ;;  %v211_v54 = vld [vmem:[#allocation5 + $0xb8] sm:$0xff]  ;;  %v696_v58 = vpack.c.bf16 %v85_v52, %v83_v47 }
  0x34   :  { %687 = vmatprep.subr.bf16.mxu0 %v686_v21  ;;  %711 = vmatprep.subr.bf16.mxu1 %v710_v42  ;;  %v88_v55 = vld [vmem:[#allocation2 + $0xc8] sm:$0xff]  ;;  %v90_v56 = vld [vmem:[#allocation2 + $0xd8] sm:$0xff]  ;;  %v716_v57 = vpack.c.bf16 %v193_v50, %v192_v49  ;;  %v87_v59 = vld [vmem:[#allocation2 + $0xc0] sm:$0xff]  ;;  %v718_v60 = vpack.c.bf16 %v211_v54, %v210_v53  ;;  %v97_v50 = vlaneseq }
  0x35   :  { %v194_v61 = vld [vmem:[#allocation5 + $0x30] sm:$0xff]  ;;  %v195_v62 = vld [vmem:[#allocation5 + $0x38] sm:$0xff]  ;;  %v698_v63 = vpack.c.bf16 %v90_v56, %v88_v55  ;;  %v212_v2 = vld [vmem:[#allocation5 + $0xc0] sm:$0xff] }
  0x36   :  { %v89_v1 = vld [vmem:[#allocation2 + $0xd0] sm:$0xff]  ;;  %v213_v3 = vld [vmem:[#allocation5 + $0xc8] sm:$0xff]  ;;  %v94_v5 = vld [vmem:[#allocation2 + $0xf8] sm:$0xff]  ;;  %v720_v6 = vpack.c.bf16 %v195_v62, %v194_v61 }
  0x37   :  { %689 = vmatpush1.bf16.msra.mxu0 %v688_v30  ;;  %713 = vmatpush3.bf16.msra.mxu1 %v712_v45  ;;  %v92_v4 = vld [vmem:[#allocation2 + $0xe8] sm:$0xff]  ;;  %v700_v7 = vpack.c.bf16 %v89_v1, %v87_v59  ;;  %v91_v8 = vld [vmem:[#allocation2 + $0xe0] sm:$0xff]  ;;  %v722_v9 = vpack.c.bf16 %v213_v3, %v212_v2  ;;  %v93_v13 = vld [vmem:[#allocation2 + $0xf0] sm:$0xff] }
  0x38   :  { %691 = vmatprep.subr.bf16.mxu0 %v690_v36  ;;  %715 = vmatprep.subr.bf16.mxu1 %v714_v48  ;;  %v196_v10 = vld [vmem:[#allocation5 + $0x40] sm:$0xff]  ;;  %v197_v11 = vld [vmem:[#allocation5 + $0x48] sm:$0xff]  ;;  %v702_v12 = vpack.c.bf16 %v94_v5, %v92_v4  ;;  %v214_v14 = vld [vmem:[#allocation5 + $0xd0] sm:$0xff]  ;;  %v704_v17 = vpack.c.bf16 %v93_v13, %v91_v8 }
  0x39   :  { %v215_v15 = vld [vmem:[#allocation5 + $0xd8] sm:$0xff]  ;;  %v724_v16 = vpack.c.bf16 %v197_v11, %v196_v10  ;;  %v198_v19 = vld [vmem:[#allocation5 + $0x50] sm:$0xff]  ;;  %v216_v21 = vld [vmem:[#allocation5 + $0xe0] sm:$0xff] }
  0x3a   :  { %v726_v18 = vpack.c.bf16 %v215_v15, %v214_v14  ;;  %v199_v20 = vld [vmem:[#allocation5 + $0x58] sm:$0xff]  ;;  %v217_v22 = vld [vmem:[#allocation5 + $0xe8] sm:$0xff]  ;;  %v61_v24 = vld [vmem:[%s1066_s0] sm:$0xff] }
  0x3b   :  { %693 = vmatpush1.bf16.msra.mxu0 %v692_v46  ;;  %717 = vmatpush3.bf16.msra.mxu1 %v716_v57  ;;  %v728_v23 = vpack.c.bf16 %v199_v20, %v198_v19  ;;  %v730_v25 = vpack.c.bf16 %v217_v22, %v216_v21  ;;  %v62_v26 = vld [vmem:[%s1066_s0 + $0x8] sm:$0xff]  ;;  %v200_v27 = vld [vmem:[#allocation5 + $0x60] sm:$0xff]  ;;  %v218_v30 = vld [vmem:[#allocation5 + $0xf0] sm:$0xff] }
  0x3c   :  { %695 = vmatprep.subr.bf16.mxu0 %v694_v51  ;;  %719 = vmatprep.subr.bf16.mxu1 %v718_v60  ;;  %v201_v28 = vld [vmem:[#allocation5 + $0x68] sm:$0xff]  ;;  %v219_v31 = vld [vmem:[#allocation5 + $0xf8] sm:$0xff]  ;;  %v202_v33 = vld [vmem:[#allocation5 + $0x70] sm:$0xff]  ;;  %v98_v51 = vshrl.u32 %v97_v50, 7 }
  0x3d   :  { %v732_v29 = vpack.c.bf16 %v201_v28, %v200_v27  ;;  %v734_v32 = vpack.c.bf16 %v219_v31, %v218_v30  ;;  %v203_v34 = vld [vmem:[#allocation5 + $0x78] sm:$0xff]  ;;  %v305_v36 = vld [vmem:[%s1071_s5 + $0x8] sm:$0xff]  ;;  %v306_v37 = vld [vmem:[%s1071_s5 + $0x10] sm:$0xff] }
  0x3e   :  { %v736_v35 = vpack.c.bf16 %v203_v34, %v202_v33  ;;  %v307_v39 = vld [vmem:[%s1071_s5 + $0x18] sm:$0xff]  ;;  %v308_v41 = vld [vmem:[%s1071_s5 + $0x20] sm:$0xff]  ;;  %v309_v42 = vld [vmem:[%s1071_s5 + $0x28] sm:$0xff]  ;;  %v99_v52 = vsub.s32 0, %v98_v51  ;;  %v103_v54 = vsub.s32 1, %v98_v51 }
  0x3f   :  { %697 = vmatpush1.bf16.msra.mxu0 %v696_v58  ;;  %721 = vmatpush3.bf16.msra.mxu1 %v720_v6  ;;  %v742_v40 = vpack.c.bf16 %v307_v39, %v306_v37  ;;  %v746_v43 = vpack.c.bf16 %v309_v42, %v308_v41  ;;  %v310_v44 = vld [vmem:[%s1071_s5 + $0x30] sm:$0xff]  ;;  %v311_v45 = vld [vmem:[%s1071_s5 + $0x38] sm:$0xff]  ;;  %v312_v47 = vld [vmem:[%s1071_s5 + $0x40] sm:$0xff] }
  0x40   :  { %699 = vmatprep.subr.bf16.mxu0 %v698_v63  ;;  %723 = vmatprep.subr.bf16.mxu1 %v722_v9  ;;  %v750_v46 = vpack.c.bf16 %v311_v45, %v310_v44  ;;  %v313_v48 = vld [vmem:[%s1071_s5 + $0x48] sm:$0xff]  ;;  %v95_v53 = vld [vmem:[%s1068_s2] sm:$0x3]  ;;  %v314_v6 = vld [vmem:[%s1071_s5 + $0x50] sm:$0xff] }
  0x41   :  { %v754_v49 = vpack.c.bf16 %v313_v48, %v312_v47  ;;  %v100_v55 = vrot.slane %v95_v53, %v99_v52  ;;  %v104_v56 = vrot.slane %v95_v53, %v103_v54  ;;  %v316_v9 = vld [vmem:[%s1071_s5 + $0x60] sm:$0xff]  ;;  %v317_v10 = vld [vmem:[%s1071_s5 + $0x68] sm:$0xff]  ;;  %v319_v13 = vld [vmem:[%s1071_s5 + $0x78] sm:$0xff] }
  0x42   :  { %v762_v11 = vpack.c.bf16 %v317_v10, %v316_v9  ;;  %v404_v15 = vld [vmem:[%s1073_s7] sm:$0xff]  ;;  %v407_v19 = vld [vmem:[%s1073_s7 + $0x18] sm:$0xff]  ;;  %v409_v22 = vld [vmem:[%s1073_s7 + $0x28] sm:$0xff] }
  0x43   :  { %701 = vmatpush1.bf16.msra.mxu0 %v700_v7  ;;  %725 = vmatpush3.bf16.msra.mxu1 %v724_v16  ;;  %v315_v7 = vld [vmem:[%s1071_s5 + $0x58] sm:$0xff]  ;;  %v405_v16 = vld [vmem:[%s1073_s7 + $0x8] sm:$0xff]  ;;  %v408_v21 = vld [vmem:[%s1073_s7 + $0x20] sm:$0xff] }
  0x44   :  { %703 = vmatprep.subr.bf16.mxu0 %v702_v12  ;;  %727 = vmatprep.subr.bf16.mxu1 %v726_v18  ;;  %v758_v8 = vpack.c.bf16 %v315_v7, %v314_v6  ;;  %v318_v12 = vld [vmem:[%s1071_s5 + $0x70] sm:$0xff]  ;;  %v770_v18 = vpack.c.bf16 %v405_v16, %v404_v15  ;;  %v550_v37 = vld [vmem:[%s1072_s6] ss:$0 sm:$0xff]  ;;  %s881_s6 = smov [#allocation7]  }
  0x45   :  { %v766_v14 = vpack.c.bf16 %v319_v13, %v318_v12  ;;  %v551_v44 = vld [vmem:[%s1074_s8] ss:$0 sm:$0xff] }
  0x47   :  { %705 = vmatpush1.bf16.msra.mxu0 %v704_v17  ;;  %729 = vmatpush3.bf16.msra.mxu1 %v728_v23  ;;  %v406_v17 = vld [vmem:[%s1073_s7 + $0x10] sm:$0xff]  ;;  %v778_v23 = vpack.c.bf16 %v409_v22, %v408_v21 }
  0x48   :  { %731 = vmatprep.subr.bf16.mxu1 %v730_v25  ;;  %v774_v20 = vpack.c.bf16 %v407_v19, %v406_v17  ;;  %v549_v25 = vld [vmem:[%s1070_s4] ss:$0 sm:$0xff] }
  0x4a   :  { %172 = vmatmul.mubr.f32.vlgmr.msra.gmra.mrb[0].mxu0 %v61_v24 }
  0x4b   :  { %177 = vmatprep.mubr.f32.mxu0 %v880_v0  ;;  %733 = vmatpush3.bf16.msra.mxu1 %v732_v29  ;;  %v304_v0 = vld [vmem:[%s1071_s5] sm:$0xff] }
  0x4c   :  { %735 = vmatprep.subr.bf16.mxu1 %v734_v32  ;;  %v738_v38 = vpack.c.bf16 %v305_v36, %v304_v0  ;;  %v411_v0 = vld [vmem:[%s1073_s7 + $0x38] sm:$0xff] }
  0x4e   :  { %178 = vmatmul.mubr.f32.gmra.mrb[2].mxu0 %v62_v26  ;;  %739 = vmatprep.subr.bf16.mxu0 %v738_v38 }
  0x4f   :  { %737 = vmatpush3.bf16.msra.mxu1 %v736_v35  ;;  %741 = vmatpush3.bf16.msra.mxu0 %v738_v38  ;;  %v410_v35 = vld [vmem:[%s1073_s7 + $0x30] sm:$0xff]  ;;  %s536_s7 = sshll.u32 %s881_s6, 4  ;;  %s537_s7 = int_to_ptr.vmem [resolvable:$true] %s536_s7 }
  0x50   :  { %743 = vmatprep.subr.bf16.mxu0 %v742_v40  ;;  %771 = vmatprep.subr.bf16.mxu1 %v770_v18  ;;  %v782_v36 = vpack.c.bf16 %v411_v0, %v410_v35  ;;  %s846_s8 = scalar_lea.vmem %s537_s7, 256  ;;  %p851_p3 = scmp.lt.s32.totalorder %s537_s7, %s537_s7 }
  0x51   :  { %p847_p2 = scmp.ne.s32.totalorder %s537_s7, %s846_s8  ;;  %p852_p4 = scmp.lt.s32.totalorder %s846_s8, %s846_s8 }
  0x53   :  { %745 = vmatpush3.bf16.msra.mxu0 %v742_v40  ;;  %p853_p5 = por %p852_p4, %p851_p3 }
  0x54   :  { %747 = vmatprep.subr.bf16.mxu0 %v746_v43 }
  0x55   :  { %p854_p6 = pnand %p853_p5, %p847_p2 }
  0x57   :  { %749 = vmatpush3.bf16.msra.mxu0 %v746_v43 }
  0x58   :  { %751 = vmatprep.subr.bf16.mxu0 %v750_v46 }
  0x5b   :  { %753 = vmatpush3.bf16.msra.mxu0 %v750_v46 }
  0x5c   :  { %755 = vmatprep.subr.bf16.mxu0 %v754_v49 }
  0x5f   :  { %757 = vmatpush3.bf16.msra.mxu0 %v754_v49 }
  0x60   :  { %759 = vmatprep.subr.bf16.mxu0 %v758_v8 }
  0x63   :  { %761 = vmatpush3.bf16.msra.mxu0 %v758_v8 }
  0x64   :  { %763 = vmatprep.subr.bf16.mxu0 %v762_v11 }
  0x67   :  { %765 = vmatpush3.bf16.msra.mxu0 %v762_v11 }
  0x68   :  { %767 = vmatprep.subr.bf16.mxu0 %v766_v14 }
  0x6b   :  { %769 = vmatpush3.bf16.msra.mxu0 %v766_v14 }
 0x11d   :  { %v173_v57 = vpop.f32.mrb[0].mxu0 }
 0x11e   :  { %v174_v58 = vadd.f32 %v173_v57, %v100_v55  ;;  %v175_v59 = vpop.f32.mrb[1].mxu0 }
 0x11f   :  { %v176_v60 = vadd.f32 %v175_v59, %v104_v56 }
 0x120   :  { %v184_v63 = vmax.f32 %v174_v58, 0.0 }
 0x121   :  { %v179_v61 = vpop.f32.mrb[2].mxu0  ;;  %v185_v62 = vmax.f32 %v176_v60, 0.0 }
 0x122   :  { %v180_v1 = vadd.f32 %v179_v61, %v100_v55  ;;  %v181_v2 = vpop.f32.mrb[3].mxu0 }
 0x123   :  { %v182_v3 = vadd.f32 %v181_v2, %v104_v56  ;;  %291 = vmatprep.mubr.f32.mxu1 %v185_v62 }
 0x124   :  { %292 = vmatmul.mubr.f32.vlgmr.msra.gmra.mrb[0].mxu1 %v184_v63  ;;  %v186_v5 = vmax.f32 %v180_v1, 0.0 }
 0x125   :  { %v187_v4 = vmax.f32 %v182_v3, 0.0  ;;  %773 = vmatpush3.bf16.msra.mxu1 %v770_v18 }
 0x126   :  { %775 = vmatprep.subr.bf16.mxu1 %v774_v20 }
 0x127   :  { %296 = vmatprep.mubr.f32.mxu1 %v187_v4 }
 0x128   :  { %297 = vmatmul.mubr.f32.gmra.mrb[2].mxu1 %v186_v5 }
 0x129   :  { %777 = vmatpush3.bf16.msra.mxu1 %v774_v20 }
 0x12a   :  { %779 = vmatprep.subr.bf16.mxu1 %v778_v23 }
 0x12d   :  { %781 = vmatpush3.bf16.msra.mxu1 %v778_v23 }
 0x12e   :  { %783 = vmatprep.subr.bf16.mxu1 %v782_v36 }
 0x131   :  { %785 = vmatpush3.bf16.msra.mxu1 %v782_v36 }
 0x1f7   :  { %v586_v24 = vpop.f32.mrb[0].mxu1 }
 0x1f8   :  { %v587_v26 = vpop.f32.mrb[1].mxu1 }
 0x1f9   :  { %v588_v27 = vadd.f32 %v587_v26, %v586_v24 }
 0x1fb   :  { %v294_v28 = vadd.f32 %v588_v27, %v549_v25  ;;  %v589_v29 = vpop.f32.mrb[2].mxu1 }
 0x1fc   :  { %v590_v30 = vpop.f32.mrb[3].mxu1 }
 0x1fd   :  { %v302_v31 = vmax.f32 %v294_v28, 0.0  ;;  %v591_v32 = vadd.f32 %v590_v30, %v589_v29 }
 0x1ff   :  { %v299_v33 = vadd.f32 %v591_v32, %v549_v25  ;;  %652 = vmatprep.mubr.f32.mxu0 %v302_v31 }
 0x201   :  { %v303_v34 = vmax.f32 %v299_v33, 0.0 }
 0x203   :  { %653 = vmatmul.mubr.f32.vlgmr.msra.gmra.mrb[4].mxu0 %v303_v34 }
 0x2d6   :  { %v654_v38 = vpop.f32.mrb[4].mxu0 }
 0x2d7   :  { %v399_v39 = vadd.f32 %v654_v38, %v550_v37  ;;  %v393_v40 = vpop.f32.mrb[5].mxu0 }
 0x2d8   :  { %v394_v41 = vadd.f32 %v550_v37, %v393_v40 }
 0x2d9   :  { %v403_v43 = vmax.f32 %v399_v39, 0.0 }
 0x2da   :  { %v402_v42 = vmax.f32 %v394_v41, 0.0 }
 0x2dc   :  { %671 = vmatprep.mubr.msk.f32.mxu1 %vm419_vm0, %v402_v42 }
 0x2dd   :  { %672 = vmatmul.mubr.msk.f32.vlgmr.msra.gmra.mrb[4].mxu1 %vm419_vm0, %v403_v43 }
 0x3b0   :  { %v673_v45 = vpop.f32.mrb[4].mxu1 }
 0x3b1   :  { %v498_v46 = vadd.f32 %v673_v45, %v551_v44  ;;  %v492_v47 = vpop.f32.mrb[5].mxu1 }
 0x3b2   :  { %v493_v48 = vadd.f32 %v551_v44, %v492_v47 }
 0x3b3   :  { %v504_v49 = vmin.f32 %v498_v46, 20.0  ;;  %vm502_vm2 = vcmp.gt.f32.partialorder %v498_v46, 20.0 }
 0x3b4   :  { %v503_v50 = vmin.f32 %v493_v48, 20.0  ;;  %vm501_vm4 = vcmp.gt.f32.partialorder %v493_v48, 20.0 }
 0x3b5   :  { %v507_v51 = vmul.f32 1.442695, %v504_v49 }
 0x3b6   :  { %v505_v52 = vmul.f32 1.442695, %v503_v50 }
 0x3b7   :  { %794 = vpow2.f32 %v507_v51 }
 0x3b8   :  { %796 = vpow2.f32 %v505_v52 }
 0x3c1   :  { %v795_v53 = vpop.eup %794 }
 0x3c2   :  { %v797_v54 = vpop.eup %796  ;;  %v518_v55 = vadd.f32 1.0, %v795_v53  ;;  %v521_v57 = vmul.f32 -0.5, %v795_v53  ;;  %v524_v61 = vand.u32 2147483647, %v795_v53 }
 0x3c3   :  { %v509_v56 = vadd.f32 1.0, %v797_v54  ;;  %v512_v58 = vmul.f32 -0.5, %v797_v54  ;;  %v515_v62 = vand.u32 2147483647, %v797_v54 }
 0x3c4   :  { %798 = vlog2.f32 %v518_v55  ;;  %v522_v59 = vadd.f32 1.0, %v521_v57  ;;  %vm525_vm1 = vcmp.lt.f32.partialorder %v524_v61, 0.0004427343 }
 0x3c5   :  { %800 = vlog2.f32 %v509_v56  ;;  %v513_v60 = vadd.f32 1.0, %v512_v58  ;;  %vm516_vm3 = vcmp.lt.f32.partialorder %v515_v62, 0.0004427343 }
 0x3c6   :  { %v523_v3 = vmul.f32 %v795_v53, %v522_v59 }
 0x3c7   :  { %v514_v5 = vmul.f32 %v797_v54, %v513_v60 }
 0x3ce   :  { %v799_v63 = vpop.eup %798 }
 0x3cf   :  { %v801_v1 = vpop.eup %800  ;;  %v520_v2 = vmul.f32 0.6931472, %v799_v63 }
 0x3d0   :  { %v511_v4 = vmul.f32 0.6931472, %v801_v1 }
 0x3d1   :  { %v526_v6 = vsel %vm525_vm1, %v523_v3, %v520_v2 }
 0x3d2   :  { %v517_v7 = vsel %vm516_vm3, %v514_v5, %v511_v4  ;;  %v528_v8 = vsel %vm502_vm2, %v498_v46, %v526_v6 }
 0x3d3   :  { %v527_v9 = vsel %vm501_vm4, %v493_v48, %v517_v7  ;;  %530 = vst [vmem:[#allocation7 + $0x8] sm:$0xff] %v528_v8 }
 0x3d4   :  { %529 = vst [vmem:[#allocation7] sm:$0xff] %v527_v9 }
 0x3d5   :  { %857 = shalt.err (!%p854_p6)
}
 0x3d6   :  { %s858_s27 = scalar_lea.hbm %s1075_s9, 256 }
 0x3d7   :  { %p859_p7 = scmp.ne.s32.totalorder %s1075_s9, %s858_s27  ;;  %p862_p8 = scmp.lt.u32.totalorder %s858_s27, %s1075_s9 }
 0x3d9   :  { %p864_p9 = pnand %p862_p8, %p859_p7 }
 0x3db   :  { %867 = shalt.err (!%p864_p9)
}
 0x3dc   :  { %542 = dma.vmem_to_hbm [thread:$0]  %s537_s7, 256, %s1075_s9, [#allocation4], %s878_s1, %s878_s1, %s879_s10  }
 0x3dd   :  { %872 = dma.done.wait [#allocation4], 256  }
 0x3de   :  { %873 = vsyncadd [#allocation4], 4294967040 }
 0x3df   :  { %546 = vsyncpa [#allocation3], 1 }
 0x3e0   :  { %547 = vsyncpa [#allocation6], 1 }
 0x3e1   :  { %548 = vsyncpa [#allocation4], 1 }

</bundles_post_ra>
